<compile_context>
chip_gen: v7x
topology: tpu7x:2x2x1
jax: 0.10.0
libtpu: 0.0.40
codegen_flags: <defaults>
</compile_context>

<pallas_src>
import jax
import jax.numpy as jnp
import numpy as np
from jax.experimental import pallas as pl
from jax.experimental.pallas import tpu as pltpu


def _round_up(x, m):
    return ((x + m - 1) // m) * m


def _vmem_budgets():
    """Generation-adaptive (workset_bytes, vmem_limit_bytes)."""
    cap = None
    try:
        info = pltpu.get_tpu_info()
        cap = getattr(info, "vmem_capacity_bytes", None)
    except Exception:
        cap = None
    if cap is not None and cap >= 100 * 1024 * 1024:
        # 128-MiB parts (v5e / v6e): big blocks amortize the ~0.35us/step overhead.
        return 64 * 1024 * 1024, 100 * 1024 * 1024
    # 64-MiB parts (v7x) or unknown: stay conservative.
    return 28 * 1024 * 1024, 48 * 1024 * 1024


# ----------------------------------------------------------------------------
# Kernel bodies.  Signature: kernel(w_ref /*SMEM (L,) f32*/, feat_0..feat_{L-1},
#                                   out_ref)
# ----------------------------------------------------------------------------
def _make_elementwise_kernel(num_layers):
    """normalize=False: purely elementwise weighted sum on a lane-dense view."""

    def kernel(w_ref, *refs):
        feat_refs = refs[:num_layers]
        out_ref = refs[num_layers]
        # TODO(synk): for bf16 inputs on v6e/v7x the multiply could stay in bf16
        # and widen only at the accumulate; kept in f32 for cross-gen simplicity.
        acc = w_ref[0] * feat_refs[0][...].astype(jnp.float32)
        for l in range(1, num_layers):
            acc = acc + w_ref[l] * feat_refs[l][...].astype(jnp.float32)
        out_ref[...] = acc.astype(out_ref.dtype)

    return kernel


def _make_ln_rowdense_kernel(num_layers, feat_dim, eps):
    """normalize=True, D % 128 == 0: one layer-norm row per block row.
    Row sums offloaded to the (otherwise idle) MXU."""
    inv_d = 1.0 / feat_dim

    def kernel(w_ref, *refs):
        feat_refs = refs[:num_layers]
        out_ref = refs[num_layers]
        ones_col = jnp.ones((feat_dim, 1), jnp.float32)
        acc = jnp.zeros(out_ref.shape, jnp.float32)
        for l in range(num_layers):
            x = feat_refs[l][...].astype(jnp.float32)                 # (TM, D)
            s = jnp.dot(x, ones_col, preferred_element_type=jnp.float32,
                        precision=jax.lax.Precision.HIGHEST)          # (TM, 1)
            mean = s * inv_d
            cen = x - mean
            ss = jnp.dot(cen * cen, ones_col,
                         preferred_element_type=jnp.float32,
                         precision=jax.lax.Precision.HIGHEST)
            var = ss * inv_d
            # layer weight folded into the rsqrt scale (one full-tile mul/layer)
            acc = acc + cen * (jax.lax.rsqrt(var + eps) * w_ref[l])
        out_ref[...] = acc.astype(out_ref.dtype)

    return kernel


def _make_ln_packed_kernel(num_layers, feat_dim, group, eps):
    """normalize=True, D < 128 with D | 128: G = 128//D layer-norm rows packed
    per 128-lane block row.  Segmented reductions and broadcast-back are done
    on the MXU via 0/1 segment matrices (row-local: lanes contract, rows don't mix)."""
    inv_d = 1.0 / feat_dim
    lanes = group * feat_dim  # == 128

    def kernel(w_ref, *refs):
        feat_refs = refs[:num_layers]
        out_ref = refs[num_layers]
        # seg[j, g] = 1 iff lane j belongs to segment g.  feat_dim divides 128
        # so it is a power of two -> `// feat_dim` lowers to a shift.
        lane = jax.lax.broadcasted_iota(jnp.int32, (lanes, group), 0)
        grp = jax.lax.broadcasted_iota(jnp.int32, (lanes, group), 1)
        seg = (lane // feat_dim == grp).astype(jnp.float32)           # (128, G)
        lane_t = jax.lax.broadcasted_iota(jnp.int32, (group, lanes), 1)
        grp_t = jax.lax.broadcasted_iota(jnp.int32, (group, lanes), 0)
        seg_t = (lane_t // feat_dim == grp_t).astype(jnp.float32)     # (G, 128)

        acc = jnp.zeros(out_ref.shape, jnp.float32)
        for l in range(num_layers):
            x = feat_refs[l][...].astype(jnp.float32)                 # (TM, 128)
            mean = jnp.dot(x, seg, preferred_element_type=jnp.float32,
                           precision=jax.lax.Precision.HIGHEST) * inv_d    # (TM, G)
            cen = x - jnp.dot(mean, seg_t, preferred_element_type=jnp.float32,
                              precision=jax.lax.Precision.HIGHEST)         # (TM, 128)
            var = jnp.dot(cen * cen, seg, preferred_element_type=jnp.float32,
                          precision=jax.lax.Precision.HIGHEST) * inv_d     # (TM, G)
            scale = jax.lax.rsqrt(var + eps) * w_ref[l]                    # (TM, G)
            acc = acc + cen * jnp.dot(scale, seg_t,
                                      preferred_element_type=jnp.float32,
                                      precision=jax.lax.Precision.HIGHEST)
        out_ref[...] = acc.astype(out_ref.dtype)

    return kernel


def _make_ln_fallback_kernel(num_layers, eps):
    """normalize=True fallback: D neither a multiple of 128 nor a divisor of 128
    (or rows don't pack evenly).  Lane-sparse but correct."""

    def kernel(w_ref, *refs):
        feat_refs = refs[:num_layers]
        out_ref = refs[num_layers]
        acc = jnp.zeros(out_ref.shape, jnp.float32)
        for l in range(num_layers):
            x = feat_refs[l][...].astype(jnp.float32)
            mean = jnp.mean(x, axis=-1, keepdims=True)
            cen = x - mean
            var = jnp.mean(cen * cen, axis=-1, keepdims=True)
            acc = acc + cen * (jax.lax.rsqrt(var + eps) * w_ref[l])
        out_ref[...] = acc.astype(out_ref.dtype)

    return kernel


# ----------------------------------------------------------------------------
# Wrapper
# ----------------------------------------------------------------------------
def feature_processor_forward(feats, weights, *, normalize=False, eps=1e-5,
                              row_tile=None):
    """feats: list of L arrays [B, T, D]; weights: (L,) raw (pre-softmax)."""
    num_layers = len(feats)
    if num_layers == 1:
        # Matches FeatureProcessor.forward(): a single selected layer is
        # returned untouched (weighted_sum / layer_norm are never reached).
        return feats[0]

    B, T, D = feats[0].shape
    N = B * T
    total = N * D
    dtype = feats[0].dtype
    itemsize = jnp.dtype(dtype).itemsize
    # dtype-native sublane multiple: 8 (f32), 16 (bf16), 32 (int8/fp8)
    sub = max(8, 32 // itemsize)

    # softmax of an L-element vector is glue; done in f32 outside the kernel.
    norm_w = jax.nn.softmax(weights.astype(jnp.float32), axis=-1)

    # ---- choose a lane-dense 2-D view + matching kernel ---------------------
    if not normalize:
        if total % 128 == 0:
            cols = 128
            for c in (1024, 512, 256, 128):
                if total % c == 0:
                    cols = c
                    break
            rows = total // cols
        else:
            # TODO(synk): N*D not a multiple of 128 -> masked (lane-sparse) stores.
            rows, cols = N, D
        kernel = _make_elementwise_kernel(num_layers)
        flops_per_elem = 2 * num_layers
    else:
        if D % 128 == 0:
            rows, cols = N, D
            kernel = _make_ln_rowdense_kernel(num_layers, D, eps)
        elif 128 % D == 0 and N % (128 // D) == 0:
            group = 128 // D
            rows, cols = N // group, 128
            kernel = _make_ln_packed_kernel(num_layers, D, group, eps)
        else:
            # TODO(synk): D doesn't tile the 128-lane vreg and rows don't pack
            # evenly -> lane-sparse reductions / masked stores in this fallback.
            rows, cols = N, D
            kernel = _make_ln_fallback_kernel(num_layers, eps)
        flops_per_elem = 8 * num_layers

    # Reshapes below are contiguous row-major flattens: layout-preserving, no copy.
    views = [f.reshape(rows, cols) for f in feats]

    # ---- tile sizing ---------------------------------------------------------
    workset_budget, vmem_limit = _vmem_budgets()
    if row_tile is None:
        # 2x double-buffered input block per layer + 2x output block + ~5 live
        # full-tile f32 temporaries inside the body (x, cen, product, acc, cast).
        per_row_bytes = cols * (2 * num_layers * itemsize + 2 * itemsize + 5 * 4)
        row_tile = workset_budget // max(per_row_bytes, 1)
        row_tile = min(row_tile, 8192)
    row_tile = max(sub, (row_tile // sub) * sub)

    # Aim for >= 8 grid steps when the input allows it, so the "parallel" row
    # axis can shard across both TensorCores on v7x.
    min_steps = 8
    steps_tile = _round_up(pl.cdiv(rows, min_steps), sub)
    row_tile = min(row_tile, max(sub, steps_tile))
    if row_tile >= rows:
        row_tile = rows          # single block == full array dims (always legal)

    grid = (pl.cdiv(rows, row_tile),)

    feat_spec = pl.BlockSpec((row_tile, cols), lambda i, w: (i, 0))
    out_spec = pl.BlockSpec((row_tile, cols), lambda i, w: (i, 0))

    cost = pl.CostEstimate(
        flops=int(flops_per_elem) * int(total),
        transcendentals=0,
        bytes_accessed=(num_layers + 1) * int(total) * itemsize,
    )

    out = pl.pallas_call(
        kernel,
        out_shape=jax.ShapeDtypeStruct((rows, cols), dtype),
        grid_spec=pltpu.PrefetchScalarGridSpec(
            num_scalar_prefetch=1,               # norm_w -> SMEM, no per-step DMA
            grid=grid,
            in_specs=[feat_spec] * num_layers,
            out_specs=out_spec,
        ),
        compiler_params=pltpu.CompilerParams(
            dimension_semantics=("parallel",),
            vmem_limit_bytes=vmem_limit,
        ),
        cost_estimate=cost,
    )(norm_w, *views)

    return out.reshape(B, T, D)


# ----------------------------------------------------------------------------
# Pure-JAX reference (mirrors FeatureProcessor.weighted_sum)
# ----------------------------------------------------------------------------
def _reference(feats, weights, normalize, eps=1e-5):
    stacked = jnp.stack(feats, axis=0).astype(jnp.float32)
    if normalize:
        mean = jnp.mean(stacked, axis=-1, keepdims=True)
        var = jnp.mean((stacked - mean) ** 2, axis=-1, keepdims=True)
        stacked = (stacked - mean) * jax.lax.rsqrt(var + eps)
    w = jax.nn.softmax(weights.astype(jnp.float32), axis=-1)
    return jnp.einsum("l,lbtd->btd", w, stacked)


if __name__ == "__main__":
    # Module config: num_layer = 4, layer_selections = None -> 4 selected
    # layers, weights Parameter initialized to zeros (per __init__).
    num_layer = 4
    B, T, D = 2, 8, 32

    key = jax.random.PRNGKey(0)
    keys = jax.random.split(key, num_layer)
    feats = [jax.random.normal(k, (B, T, D), dtype=jnp.float32) for k in keys]
    weights = jnp.zeros((num_layer,), dtype=jnp.float32)  # torch.zeros(L)

    ok = True
    for normalize in (False, True):
        out = feature_processor_forward(feats, weights, normalize=normalize)
        out = jax.block_until_ready(out)
        ref = _reference(feats, weights, normalize)
        if not np.allclose(np.asarray(out), np.asarray(ref), atol=1e-4, rtol=1e-4):
            ok = False

    if ok:
        print("KERNEL_OK")
</pallas_src>

<mosaic_0001>
module attributes {stable_mosaic.version = 11 : i64} {
  func.func @kernel(%arg0: i32, %arg1: memref<4xf32, #tpu.memory_space<smem>>, %arg2: memref<1x512xf32, #tpu.memory_space<vmem>>, %arg3: memref<1x512xf32, #tpu.memory_space<vmem>>, %arg4: memref<1x512xf32, #tpu.memory_space<vmem>>, %arg5: memref<1x512xf32, #tpu.memory_space<vmem>>, %arg6: memref<1x512xf32, #tpu.memory_space<vmem>>) attributes {dimension_semantics = [#tpu.dimension_semantics<parallel>], iteration_bounds = array<i64: 1>, scalar_prefetch = 1 : i64, scratch_operands = 0 : i64, tpu.core_type = #tpu.core_type<tc>, window_params = [{transform_indices = @transform_0, window_bounds = array<i64: 1, 512>}, {transform_indices = @transform_1, window_bounds = array<i64: 1, 512>}, {transform_indices = @transform_2, window_bounds = array<i64: 1, 512>}, {transform_indices = @transform_3, window_bounds = array<i64: 1, 512>}, {transform_indices = @transform_4, window_bounds = array<i64: 1, 512>}]} {
    %c0 = arith.constant 0 : index
    %0 = memref.load %arg1[%c0] : memref<4xf32, #tpu.memory_space<smem>>
    %c0_0 = arith.constant 0 : index
    %c0_1 = arith.constant 0 : index
    %1 = vector.load %arg2[%c0_0, %c0_1] : memref<1x512xf32, #tpu.memory_space<vmem>>, vector<1x512xf32>
    %2 = vector.broadcast %0 : f32 to vector<1x512xf32>
    %3 = arith.mulf %2, %1 : vector<1x512xf32>
    %c1 = arith.constant 1 : index
    %4 = memref.load %arg1[%c1] : memref<4xf32, #tpu.memory_space<smem>>
    %c0_2 = arith.constant 0 : index
    %c0_3 = arith.constant 0 : index
    %5 = vector.load %arg3[%c0_2, %c0_3] : memref<1x512xf32, #tpu.memory_space<vmem>>, vector<1x512xf32>
    %6 = vector.broadcast %4 : f32 to vector<1x512xf32>
    %7 = arith.mulf %6, %5 : vector<1x512xf32>
    %8 = arith.addf %3, %7 : vector<1x512xf32>
    %c2 = arith.constant 2 : index
    %9 = memref.load %arg1[%c2] : memref<4xf32, #tpu.memory_space<smem>>
    %c0_4 = arith.constant 0 : index
    %c0_5 = arith.constant 0 : index
    %10 = vector.load %arg4[%c0_4, %c0_5] : memref<1x512xf32, #tpu.memory_space<vmem>>, vector<1x512xf32>
    %11 = vector.broadcast %9 : f32 to vector<1x512xf32>
    %12 = arith.mulf %11, %10 : vector<1x512xf32>
    %13 = arith.addf %8, %12 : vector<1x512xf32>
    %c3 = arith.constant 3 : index
    %14 = memref.load %arg1[%c3] : memref<4xf32, #tpu.memory_space<smem>>
    %c0_6 = arith.constant 0 : index
    %c0_7 = arith.constant 0 : index
    %15 = vector.load %arg5[%c0_6, %c0_7] : memref<1x512xf32, #tpu.memory_space<vmem>>, vector<1x512xf32>
    %16 = vector.broadcast %14 : f32 to vector<1x512xf32>
    %17 = arith.mulf %16, %15 : vector<1x512xf32>
    %18 = arith.addf %13, %17 : vector<1x512xf32>
    %c0_8 = arith.constant 0 : index
    %c0_9 = arith.constant 0 : index
    %19 = vector.load %arg6[%c0_8, %c0_9] : memref<1x512xf32, #tpu.memory_space<vmem>>, vector<1x512xf32>
    tpu.vector_store %arg6[%c0_8, %c0_9], %18 {strides = array<i32>} : memref<1x512xf32, #tpu.memory_space<vmem>>, vector<1x512xf32>,
    return
  }
  func.func @transform_0(%arg0: i32, %arg1: memref<4xf32, #tpu.memory_space<smem>>) -> (i32, i32) {
    %c0_i32 = arith.constant 0 : i32
    %c0_i32_0 = arith.constant 0 : i32
    return %arg0, %c0_i32 : i32, i32
  }
  func.func @transform_1(%arg0: i32, %arg1: memref<4xf32, #tpu.memory_space<smem>>) -> (i32, i32) {
    %c0_i32 = arith.constant 0 : i32
    %c0_i32_0 = arith.constant 0 : i32
    return %arg0, %c0_i32 : i32, i32
  }
  func.func @transform_2(%arg0: i32, %arg1: memref<4xf32, #tpu.memory_space<smem>>) -> (i32, i32) {
    %c0_i32 = arith.constant 0 : i32
    %c0_i32_0 = arith.constant 0 : i32
    return %arg0, %c0_i32 : i32, i32
  }
  func.func @transform_3(%arg0: i32, %arg1: memref<4xf32, #tpu.memory_space<smem>>) -> (i32, i32) {
    %c0_i32 = arith.constant 0 : i32
    %c0_i32_0 = arith.constant 0 : i32
    return %arg0, %c0_i32 : i32, i32
  }
  func.func @transform_4(%arg0: i32, %arg1: memref<4xf32, #tpu.memory_space<smem>>) -> (i32, i32) {
    %c0_i32 = arith.constant 0 : i32
    %c0_i32_0 = arith.constant 0 : i32
    return %arg0, %c0_i32 : i32, i32
  }
}

</mosaic_0001>

<bundles_post_ra>
// kernel: tpu_custom_call.1
= control target key start
LH: loop header
LB: loop body
LE: loop exit
PB: predicated region body
PF: predicated region fallthrough
CT: control target
= control target key end

     0   :  { %s218_s0 = inlined_call_operand.hbm [shape: f32[4], index: 0, kind: input, shape index: {}]   ;;  %s219_s1 = inlined_call_operand.hbm [shape: f32[1,512], index: 1, kind: input, shape index: {}]   ;;  %s220_s2 = inlined_call_operand.vmem [shape: f32[1,512], index: 2, kind: input, shape index: {}]   ;;  %s221_s3 = inlined_call_operand.vmem [shape: f32[1,512], index: 3, kind: input, shape index: {}]   ;;  %s222_s4 = inlined_call_operand.vmem [shape: f32[1,512], index: 4, kind: input, shape index: {}]   ;;  %s223_s5 = inlined_call_operand.hbm [shape: f32[1,512], index: 5, kind: output, shape index: {}]  }
   0x1   :  { %s80_s20 = scalar_lea.hbm %s218_s0, 16 }
   0x2   :  { %p81_p0 = scmp.ne.s32.totalorder %s218_s0, %s80_s20  ;;  %p84_p1 = scmp.lt.u32.totalorder %s80_s20, %s218_s0 }
   0x4   :  { %p86_p2 = pnand %p84_p1, %p81_p0 }
   0x6   :  { %89 = shalt.err (!%p86_p2)  }
   0x7   :  { %s140_s25 = smov [#allocation3]  }
   0x8   :  { %11 = dma.hbm_to_smem %s218_s0, 16, %s140_s25, [#allocation2] }
   0x9   :  { %134 = dma.done.wait [#allocation2], 16 }
   0xa   :  { %135 = vsyncadd [#allocation2], 4294967280 }
   0xb   :  { %13 = sfence }
   0xc   :  { %14 = vsyncpa [#allocation5], 0 }
   0xd   :  { %15 = vsyncpa [#allocation6], 0  ;;  %s141_s28 = smov [#allocation4]   ;;  %s90_s7 = scalar_lea.hbm %s219_s1, 64 }
   0xe   :  { %s22_s29 = sshll.u32 %s141_s28, 4  ;;  %p91_p3 = scmp.ne.s32.totalorder %s219_s1, %s90_s7  ;;  %s23_s29 = int_to_ptr.vmem [resolvable:$true] %s22_s29 }
   0xf   :  { %p94_p4 = scmp.lt.u32.totalorder %s90_s7, %s219_s1 }
  0x11   :  { %p96_p5 = pnand %p94_p4, %p91_p3 }
  0x13   :  { %99 = shalt.err (!%p96_p5)
}
  0x14   :  { %s100_s0 = scalar_lea.vmem %s23_s29, 64  ;;  %p105_p7 = scmp.lt.s32.totalorder %s23_s29, %s23_s29 }
  0x15   :  { %p101_p6 = scmp.ne.s32.totalorder %s23_s29, %s100_s0  ;;  %p106_p8 = scmp.lt.s32.totalorder %s100_s0, %s100_s0 }
  0x17   :  { %p107_p9 = por %p106_p8, %p105_p7 }
  0x19   :  { %p108_p10 = pnand %p107_p9, %p101_p6 }
  0x1b   :  { %111 = shalt.err (!%p108_p10)
}
  0x1c   :  { %25 = dma.hbm_to_vmem [thread:$0]  %s219_s1, 64, %s23_s29, [#allocation5]  }
  0x1d   :  { %136 = dma.done.wait [#allocation5], 64  }
  0x1e   :  { %137 = vsyncadd [#allocation5], 4294967232  ;;  %s35_s14 = sld [smem:[#allocation3]]  ;;  %s74_s15 = sld [smem:[#allocation3 + $0x1]]  ;;  %v36_v0 = vld [vmem:[#allocation4] sm:$0xf]  ;;  %v54_v11 = vlaneseq }
  0x1f   :  { %s75_s16 = sld [smem:[#allocation3 + $0x2]]  ;;  %s76_s17 = sld [smem:[#allocation3 + $0x3]]  ;;  %v40_v2 = vld [vmem:[%s220_s2] sm:$0xf] }
  0x20   :  { %v45_v4 = vld [vmem:[%s221_s3] sm:$0xf]  ;;  %s142_s23 = smov [#allocation7]   ;;  %vm56_vm0 = vcmp.lt.s32.totalorder %v54_v11, 512 }
  0x21   :  { %v50_v8 = vld [vmem:[%s222_s4] sm:$0xf]  ;;  %s65_s24 = sshll.u32 %s142_s23, 4  ;;  %s66_s24 = int_to_ptr.vmem [resolvable:$true] %s65_s24 }
  0x22   :  { %s112_s2 = scalar_lea.vmem %s66_s24, 64  ;;  %p117_p12 = scmp.lt.s32.totalorder %s66_s24, %s66_s24 }
  0x23   :  { %p113_p11 = scmp.ne.s32.totalorder %s66_s24, %s112_s2  ;;  %p118_p13 = scmp.lt.s32.totalorder %s112_s2, %s112_s2 }
  0x24   :  { %v37_v1 = vstv %s35_s14  ;;  %v41_v3 = vstv %s74_s15 }
  0x25   :  { %v38_v5 = vmul.f32 %v37_v1, %v36_v0  ;;  %v42_v6 = vmul.f32 %v41_v3, %v40_v2  ;;  %v46_v7 = vstv %s75_s16  ;;  %v51_v9 = vstv %s76_s17  ;;  %p119_p0 = por %p118_p13, %p117_p12 }
  0x26   :  { %v47_v10 = vmul.f32 %v46_v7, %v45_v4  ;;  %v52_v13 = vmul.f32 %v51_v9, %v50_v8 }
  0x27   :  { %v43_v12 = vadd.f32 %v42_v6, %v38_v5  ;;  %p120_p1 = pnand %p119_p0, %p113_p11 }
  0x29   :  { %v48_v14 = vadd.f32 %v47_v10, %v43_v12 }
  0x2b   :  { %v53_v15 = vadd.f32 %v52_v13, %v48_v14 }
  0x2d   :  { %58 = vst.msk [vmem:[#allocation7] sm:$0xf] %vm56_vm0, %v53_v15 }
  0x2e   :  { %123 = shalt.err (!%p120_p1)
}
  0x2f   :  { %s124_s25 = scalar_lea.hbm %s223_s5, 64 }
  0x30   :  { %p125_p2 = scmp.ne.s32.totalorder %s223_s5, %s124_s25  ;;  %p128_p3 = scmp.lt.u32.totalorder %s124_s25, %s223_s5 }
  0x32   :  { %p130_p4 = pnand %p128_p3, %p125_p2 }
  0x34   :  { %133 = shalt.err (!%p130_p4)
}
  0x35   :  { %68 = dma.vmem_to_hbm [thread:$0]  %s66_s24, 64, %s223_s5, [#allocation6]  }
  0x36   :  { %138 = dma.done.wait [#allocation6], 64  }
  0x37   :  { %139 = vsyncadd [#allocation6], 4294967232 }
  0x38   :  { %72 = vsyncpa [#allocation5], 1 }
  0x39   :  { %73 = vsyncpa [#allocation6], 1 }

</bundles_post_ra>
